<compile_context>
chip_gen: v7x
topology: tpu7x:2x2x1
jax: 0.10.0
libtpu: 0.0.40
codegen_flags: <defaults>
</compile_context>

<pallas_src>
import jax
import jax.numpy as jnp
from jax.experimental import pallas as pl
from jax.experimental.pallas import tpu as pltpu


def _round_up(x, m):
    return ((x + m - 1) // m) * m


# --------------------------------------------------------------------------
# Kernels
# --------------------------------------------------------------------------

def _ffn_kernel_resident(x_ref, w1_ref, b1_ref, w2_ref, b2_ref, o_ref):
    """Full FFN for one row tile; W1/W2 are VMEM-resident (constant block idx)."""
    h = jnp.dot(x_ref[...], w1_ref[...], preferred_element_type=jnp.float32)
    h = jnp.maximum(h + b1_ref[...].astype(jnp.float32), 0.0)
    # dropout: identity in eval mode
    y = jnp.dot(h.astype(w2_ref.dtype), w2_ref[...],
                preferred_element_type=jnp.float32)
    o_ref[...] = (y + b2_ref[...].astype(jnp.float32)).astype(o_ref.dtype)


def _ffn_kernel_tiled(x_ref, w1_ref, b1_ref, w2_ref, b2_ref, o_ref, acc_ref):
    """One (row tile, hidden slab) reduction step of the FFN."""
    h_idx = pl.program_id(1)

    @pl.when(h_idx == 0)
    def _init():
        acc_ref[...] = jnp.zeros_like(acc_ref)

    # linear1 on this hidden slab + bias + ReLU (elementwise -> exact per-slab)
    h = jnp.dot(x_ref[...], w1_ref[...], preferred_element_type=jnp.float32)
    h = jnp.maximum(h + b1_ref[...].astype(jnp.float32), 0.0)
    # dropout: identity in eval mode

    # partial linear2: accumulate this slab's contribution in f32
    acc_ref[...] += jnp.dot(h.astype(w2_ref.dtype), w2_ref[...],
                            preferred_element_type=jnp.float32)

    @pl.when(h_idx == pl.num_programs(1) - 1)
    def _finalize():
        o_ref[...] = (acc_ref[...] +
                      b2_ref[...].astype(jnp.float32)).astype(o_ref.dtype)


# --------------------------------------------------------------------------
# Host-side helpers
# --------------------------------------------------------------------------

def _vmem_capacity_bytes():
    try:
        return int(pltpu.get_tpu_info().vmem_capacity_bytes)
    except Exception:
        return 64 << 20     # conservative fallback (v7x per-TC capacity)


def _largest_hidden_divisor(hidden, cap):
    """Largest divisor of `hidden` that is <= cap and a multiple of 128."""
    d = (min(cap, hidden) // 128) * 128
    while d >= 128:
        if hidden % d == 0:
            return d
        d -= 128
    return None


def _pick_row_tile(M, tm, itemsize):
    """Row (token) tile: sublane-packed for the dtype, multiple of 128 when possible."""
    pack = 8 * max(1, 4 // itemsize)          # 8 rows f32, 16 bf16, 32 int8
    if M <= tm:
        TM = _round_up(M, pack)
    elif tm >= 128:
        TM = (tm // 128) * 128                # MXU-friendly
    else:
        TM = _round_up(tm, pack)
    TM = max(TM, pack)
    M_pad = _round_up(M, TM)
    # Keep >= 2 row tiles so the "parallel" axis can shard across v7x's 2 TCs,
    # but only when that does not blow up the padding (M large enough).
    if M >= 256 and M_pad // TM < 2:
        TM = _round_up((M + 1) // 2, pack)
        M_pad = _round_up(M, TM)
    return TM, M_pad


# --------------------------------------------------------------------------
# Public wrapper
# --------------------------------------------------------------------------

def positionwise_feed_forward(x, w1, b1, w2, b2, *, tm=None, th=None,
                              vmem_limit_bytes=None, _force_tiled=False):
    """x: (batch, seq, d_model) -> (batch, seq, d_model).

    tm: row (token) tile size.  th: hidden-dim slab size (only used when the
    weights cannot be held VMEM-resident).  Defaults are derived per chip.
    """
    batch, seq, d_model = x.shape
    d_in, hidden = w1.shape
    assert d_in == d_model and w2.shape == (hidden, d_model)
    assert b1.shape == (hidden,) and b2.shape == (d_model,)

    capacity = _vmem_capacity_bytes()
    budget = int(capacity * 0.9) - (2 << 20)          # leave headroom
    big_vmem = capacity >= (96 << 20)                 # v5e/v6e (128 MiB) vs v7x (64 MiB)
    if tm is None:
        tm = 1024 if big_vmem else 512
    if th is None:
        th = 2048 if big_vmem else 1024

    M = batch * seq
    x2d = x.reshape(M, d_model)
    it = jnp.dtype(x.dtype).itemsize
    wit = jnp.dtype(w1.dtype).itemsize

    TM, M_pad = _pick_row_tile(M, tm, it)

    # ---- can the full weights be VMEM-resident? ----
    def resident_need(tm_):
        return (4 * tm_ * d_model * it                 # x + out tiles, double-buffered
                + 2 * 2 * d_model * hidden * wit       # W1 + W2 (counted double-buffered)
                + 2 * 8 * (hidden + d_model) * wit     # biases (sublane-padded)
                + tm_ * hidden * 4                     # f32 intermediate h
                + tm_ * d_model * 4)                   # f32 result before downcast

    use_resident = (not _force_tiled) and resident_need(TM) <= budget
    if (not _force_tiled) and not use_resident:
        # Try shrinking TM (>=128) before giving up on residency.
        tm_try = TM
        while tm_try > 128:
            tm_try = max(128, tm_try // 2)
            if resident_need(tm_try) <= budget:
                TM, M_pad = _pick_row_tile(M, tm_try, it)
                use_resident = resident_need(TM) <= budget
                break

    if M_pad != M:
        x2d = jnp.pad(x2d, ((0, M_pad - M), (0, 0)))

    b2_2d = b2.reshape(1, d_model)
    grid_rows = M_pad // TM

    if use_resident:
        # ---------------- RESIDENT path: 1-D row grid, weights DMA'd once ----
        b1_2d = b1.reshape(1, hidden)
        need = resident_need(TM)
        vlimit = vmem_limit_bytes
        if vlimit is None:
            vlimit = min(capacity, max(need + (8 << 20), 32 << 20))

        cost = pl.CostEstimate(
            flops=4 * M_pad * d_model * hidden,
            transcendentals=0,
            bytes_accessed=(2 * M_pad * d_model) * it
            + (2 * d_model * hidden + hidden + d_model) * wit,
        )

        out2d = pl.pallas_call(
            _ffn_kernel_resident,
            out_shape=jax.ShapeDtypeStruct((M_pad, d_model), x.dtype),
            grid=(grid_rows,),
            in_specs=[
                pl.BlockSpec((TM, d_model), lambda i: (i, 0)),       # x row tile
                pl.BlockSpec((d_model, hidden), lambda i: (0, 0)),   # W1 (resident)
                pl.BlockSpec((1, hidden), lambda i: (0, 0)),         # b1 (resident)
                pl.BlockSpec((hidden, d_model), lambda i: (0, 0)),   # W2 (resident)
                pl.BlockSpec((1, d_model), lambda i: (0, 0)),        # b2 (resident)
            ],
            out_specs=pl.BlockSpec((TM, d_model), lambda i: (i, 0)),
            compiler_params=pltpu.CompilerParams(
                dimension_semantics=("parallel",),
                vmem_limit_bytes=vlimit,
            ),
            cost_estimate=cost,
        )(x2d, w1, b1_2d, w2, b2_2d)

        return out2d[:M].reshape(batch, seq, d_model)

    # ---------------- TILED path: 2-D grid, hidden-slab reduction ------------
    # Pick TH as a divisor of hidden (multiple of 128) -> no per-call weight pad.
    TH = _largest_hidden_divisor(hidden, th)
    if TH is not None:
        w1p, b1p, w2p, H_pad = w1, b1, w2, hidden
    else:
        # Last-resort fallback: hidden has no 128-multiple divisor <= th; pad.
        H_pad = _round_up(hidden, 128)
        TH = min(_round_up(min(th, H_pad), 128), H_pad)
        H_pad = _round_up(hidden, TH)
        w1p = jnp.pad(w1, ((0, 0), (0, H_pad - hidden)))
        b1p = jnp.pad(b1, ((0, H_pad - hidden),))
        w2p = jnp.pad(w2, ((0, H_pad - hidden), (0, 0)))

    def tiled_need(tm_, th_):
        return (4 * tm_ * d_model * it                 # x + out tiles
                + 4 * d_model * th_ * wit              # W1 + W2 slabs, double-buffered
                + 2 * 8 * th_ * wit + 2 * 8 * d_model * wit
                + tm_ * d_model * 4                    # acc scratch
                + tm_ * th_ * 4)                       # f32 intermediate h

    # Shrink TH (through valid divisors), then TM, until the footprint fits.
    while tiled_need(TM, TH) > budget and TH > 128:
        nxt = _largest_hidden_divisor(H_pad, TH - 128)
        if nxt is None:
            break
        TH = nxt
    while tiled_need(TM, TH) > budget and TM > 128:
        TM = max(128, TM // 2)
    M_pad2 = _round_up(M, TM)
    if M_pad2 != M_pad:
        x2d = x2d[:M]
        if M_pad2 != M:
            x2d = jnp.pad(x2d, ((0, M_pad2 - M), (0, 0)))
        M_pad = M_pad2
        grid_rows = M_pad // TM

    b1_2d = b1p.reshape(1, H_pad)
    grid = (grid_rows, H_pad // TH)

    need = tiled_need(TM, TH)
    vlimit = vmem_limit_bytes
    if vlimit is None:
        vlimit = min(capacity, max(need + (8 << 20), 32 << 20))

    cost = pl.CostEstimate(
        flops=4 * M_pad * d_model * H_pad,
        transcendentals=0,
        bytes_accessed=(2 * M_pad * d_model) * it
        + grid_rows * (2 * d_model * H_pad + H_pad + d_model) * wit,
    )

    out2d = pl.pallas_call(
        _ffn_kernel_tiled,
        out_shape=jax.ShapeDtypeStruct((M_pad, d_model), x.dtype),
        grid=grid,
        in_specs=[
            pl.BlockSpec((TM, d_model), lambda i, h: (i, 0)),   # x row tile
            pl.BlockSpec((d_model, TH), lambda i, h: (0, h)),   # W1 hidden slab
            pl.BlockSpec((1, TH), lambda i, h: (0, h)),         # b1 hidden slab
            pl.BlockSpec((TH, d_model), lambda i, h: (h, 0)),   # W2 hidden slab
            pl.BlockSpec((1, d_model), lambda i, h: (0, 0)),    # b2 (resident)
        ],
        out_specs=pl.BlockSpec((TM, d_model), lambda i, h: (i, 0)),
        scratch_shapes=[pltpu.VMEM((TM, d_model), jnp.float32)],
        compiler_params=pltpu.CompilerParams(
            dimension_semantics=("parallel", "arbitrary"),
            vmem_limit_bytes=vlimit,
        ),
        cost_estimate=cost,
    )(x2d, w1p, b1_2d, w2p, b2_2d)

    return out2d[:M].reshape(batch, seq, d_model)


def init_params(key, d_model, hidden, dtype=jnp.float32):
    """Deterministic init mimicking torch.nn.Linear (uniform +-1/sqrt(fan_in))."""
    k1, k2, k3, k4 = jax.random.split(key, 4)
    lim1 = 1.0 / (d_model ** 0.5)
    lim2 = 1.0 / (hidden ** 0.5)
    # stored as (in_features, out_features) so the kernel can do x @ W directly
    w1 = jax.random.uniform(k1, (d_model, hidden), dtype, -lim1, lim1)
    b1 = jax.random.uniform(k2, (hidden,), dtype, -lim1, lim1)
    w2 = jax.random.uniform(k3, (hidden, d_model), dtype, -lim2, lim2)
    b2 = jax.random.uniform(k4, (d_model,), dtype, -lim2, lim2)
    return w1, b1, w2, b2


if __name__ == "__main__":
    key = jax.random.PRNGKey(0)
    # Small demo shapes consistent with the module (d_model -> hidden -> d_model).
    batch, seq, d_model, hidden = 2, 60, 128, 256

    kx, kp = jax.random.split(key)
    x = jax.random.normal(kx, (batch, seq, d_model), jnp.float32)
    w1, b1, w2, b2 = init_params(kp, d_model, hidden)

    # pure-JAX reference (eval-mode dropout == identity)
    hp = jax.lax.Precision.HIGHEST
    h_ref = jnp.maximum(jnp.dot(x, w1, precision=hp) + b1, 0.0)
    y_ref = jnp.dot(h_ref, w2, precision=hp) + b2

    # 1) default path: weights VMEM-resident, 1-D row grid
    y_res = jax.block_until_ready(positionwise_feed_forward(x, w1, b1, w2, b2))
    assert y_res.shape == (batch, seq, d_model)
    assert jnp.allclose(y_res, y_ref, atol=2e-4, rtol=2e-4), float(
        jnp.max(jnp.abs(y_res - y_ref)))

    # 2) hidden-slab reduction path (used for very large d_model*hidden),
    #    exercised here with small tiles: grid = (2 row tiles, 2 hidden slabs)
    y_tiled = jax.block_until_ready(
        positionwise_feed_forward(x, w1, b1, w2, b2, tm=64, th=128,
                                  _force_tiled=True))
    assert jnp.allclose(y_tiled, y_ref, atol=2e-4, rtol=2e-4), float(
        jnp.max(jnp.abs(y_tiled - y_ref)))

    print("KERNEL_OK")
</pallas_src>

<mosaic_0001>
module attributes {stable_mosaic.version = 11 : i64} {
  func.func @_ffn_kernel_resident(%arg0: i32, %arg1: memref<120x128xf32, #tpu.memory_space<vmem>>, %arg2: memref<128x256xf32, #tpu.memory_space<vmem>>, %arg3: memref<1x256xf32, #tpu.memory_space<vmem>>, %arg4: memref<256x128xf32, #tpu.memory_space<vmem>>, %arg5: memref<1x128xf32, #tpu.memory_space<vmem>>, %arg6: memref<120x128xf32, #tpu.memory_space<vmem>>) attributes {dimension_semantics = [#tpu.dimension_semantics<parallel>], iteration_bounds = array<i64: 1>, scalar_prefetch = 0 : i64, scratch_operands = 0 : i64, tpu.core_type = #tpu.core_type<tc>, window_params = [{transform_indices = @transform_0, window_bounds = array<i64: 120, 128>}, {pipeline_mode = #tpu.pipeline_mode<synchronous>, transform_indices = @transform_1, window_bounds = array<i64: 128, 256>}, {pipeline_mode = #tpu.pipeline_mode<synchronous>, transform_indices = @transform_2, window_bounds = array<i64: 1, 256>}, {pipeline_mode = #tpu.pipeline_mode<synchronous>, transform_indices = @transform_3, window_bounds = array<i64: 256, 128>}, {pipeline_mode = #tpu.pipeline_mode<synchronous>, transform_indices = @transform_4, window_bounds = array<i64: 1, 128>}, {transform_indices = @transform_5, window_bounds = array<i64: 120, 128>}]} {
    %c0 = arith.constant 0 : index
    %c0_0 = arith.constant 0 : index
    %0 = vector.load %arg1[%c0, %c0_0] : memref<120x128xf32, #tpu.memory_space<vmem>>, vector<120x128xf32>
    %c0_1 = arith.constant 0 : index
    %c0_2 = arith.constant 0 : index
    %1 = vector.load %arg2[%c0_1, %c0_2] : memref<128x256xf32, #tpu.memory_space<vmem>>, vector<128x256xf32>
    %cst = arith.constant dense<0.000000e+00> : vector<120x256xf32>
    %2 = tpu.matmul %0, %1, %cst {dimension_numbers = #tpu.dot_dimension_numbers<[1], [0], [0], [1], [0, 0, 1, 1], [], []>} : vector<120x128xf32>, vector<128x256xf32>, vector<120x256xf32> -> vector<120x256xf32>
    %c0_3 = arith.constant 0 : index
    %c0_4 = arith.constant 0 : index
    %3 = vector.load %arg3[%c0_3, %c0_4] : memref<1x256xf32, #tpu.memory_space<vmem>>, vector<1x256xf32>
    %4 = vector.broadcast %3 : vector<1x256xf32> to vector<120x256xf32>
    %5 = arith.addf %2, %4 : vector<120x256xf32>
    %cst_5 = arith.constant 0.000000e+00 : f32
    %6 = vector.broadcast %cst_5 : f32 to vector<120x256xf32>
    %7 = arith.maximumf %5, %6 : vector<120x256xf32>
    %c0_6 = arith.constant 0 : index
    %c0_7 = arith.constant 0 : index
    %8 = vector.load %arg4[%c0_6, %c0_7] : memref<256x128xf32, #tpu.memory_space<vmem>>, vector<256x128xf32>
    %cst_8 = arith.constant dense<0.000000e+00> : vector<120x128xf32>
    %9 = tpu.matmul %7, %8, %cst_8 {dimension_numbers = #tpu.dot_dimension_numbers<[1], [0], [0], [1], [0, 0, 1, 1], [], []>} : vector<120x256xf32>, vector<256x128xf32>, vector<120x128xf32> -> vector<120x128xf32>
    %c0_9 = arith.constant 0 : index
    %c0_10 = arith.constant 0 : index
    %10 = vector.load %arg5[%c0_9, %c0_10] : memref<1x128xf32, #tpu.memory_space<vmem>>, vector<1x128xf32>
    %11 = vector.broadcast %10 : vector<1x128xf32> to vector<120x128xf32>
    %12 = arith.addf %9, %11 : vector<120x128xf32>
    %c0_11 = arith.constant 0 : index
    %c0_12 = arith.constant 0 : index
    %13 = vector.load %arg6[%c0_11, %c0_12] : memref<120x128xf32, #tpu.memory_space<vmem>>, vector<120x128xf32>
    tpu.vector_store %arg6[%c0_11, %c0_12], %12 {strides = array<i32>} : memref<120x128xf32, #tpu.memory_space<vmem>>, vector<120x128xf32>,
    return
  }
  func.func @transform_0(%arg0: i32) -> (i32, i32) {
    %c0_i32 = arith.constant 0 : i32
    %c0_i32_0 = arith.constant 0 : i32
    return %arg0, %c0_i32 : i32, i32
  }
  func.func @transform_1(%arg0: i32) -> (i32, i32) {
    %c0_i32 = arith.constant 0 : i32
    %c0_i32_0 = arith.constant 0 : i32
    %c0_i32_1 = arith.constant 0 : i32
    return %c0_i32, %c0_i32_0 : i32, i32
  }
  func.func @transform_2(%arg0: i32) -> (i32, i32) {
    %c0_i32 = arith.constant 0 : i32
    %c0_i32_0 = arith.constant 0 : i32
    %c0_i32_1 = arith.constant 0 : i32
    return %c0_i32, %c0_i32_0 : i32, i32
  }
  func.func @transform_3(%arg0: i32) -> (i32, i32) {
    %c0_i32 = arith.constant 0 : i32
    %c0_i32_0 = arith.constant 0 : i32
    %c0_i32_1 = arith.constant 0 : i32
    return %c0_i32, %c0_i32_0 : i32, i32
  }
  func.func @transform_4(%arg0: i32) -> (i32, i32) {
    %c0_i32 = arith.constant 0 : i32
    %c0_i32_0 = arith.constant 0 : i32
    %c0_i32_1 = arith.constant 0 : i32
    return %c0_i32, %c0_i32_0 : i32, i32
  }
  func.func @transform_5(%arg0: i32) -> (i32, i32) {
    %c0_i32 = arith.constant 0 : i32
    %c0_i32_0 = arith.constant 0 : i32
    return %arg0, %c0_i32 : i32, i32
  }
}

</mosaic_0001>

<bundles_post_ra>
// kernel: tpu_custom_call.1
= control target key start
LH: loop header
LB: loop body
LE: loop exit
PB: predicated region body
PF: predicated region fallthrough
CT: control target
= control target key end

     0   :  { %10 = vsyncpa [#allocation3], 0  ;;  %s931_s0 = inlined_call_operand.hbm [shape: f32[120,128], index: 0, kind: input, shape index: {}]   ;;  %s932_s1 = inlined_call_operand.hbm [shape: f32[128,256], index: 1, kind: input, shape index: {}]   ;;  %s933_s2 = inlined_call_operand.vmem [shape: f32[1,256], index: 2, kind: input, shape index: {}]   ;;  %s934_s3 = inlined_call_operand.hbm [shape: f32[256,128], index: 3, kind: input, shape index: {}]   ;;  %s935_s4 = inlined_call_operand.vmem [shape: f32[1,128], index: 4, kind: input, shape index: {}]   ;;  %s936_s5 = inlined_call_operand.hbm [shape: f32[120,128], index: 5, kind: output, shape index: {}]  }
   0x1   :  { %11 = vsyncpa [#allocation6], 0 }
   0x2   :  { %12 = vsyncpa [#allocation4], 0  ;;  %s763_s18 = smov [#allocation5]   ;;  %s669_s22 = scalar_lea.hbm %s932_s1, 4096 }
   0x3   :  { %s30_s19 = sshll.u32 %s763_s18, 4  ;;  %p670_p0 = scmp.ne.s32.totalorder %s932_s1, %s669_s22  ;;  %s31_s19 = int_to_ptr.vmem [resolvable:$true] %s30_s19 }
   0x4   :  { %p673_p1 = scmp.lt.u32.totalorder %s669_s22, %s932_s1 }
   0x6   :  { %p675_p2 = pnand %p673_p1, %p670_p0 }
   0x8   :  { %678 = shalt.err (!%p675_p2)
}
   0x9   :  { %s679_s27 = scalar_lea.vmem %s31_s19, 4096  ;;  %p684_p4 = scmp.lt.s32.totalorder %s31_s19, %s31_s19 }
   0xa   :  { %p680_p3 = scmp.ne.s32.totalorder %s31_s19, %s679_s27  ;;  %p685_p5 = scmp.lt.s32.totalorder %s679_s27, %s679_s27 }
   0xc   :  { %p686_p6 = por %p685_p5, %p684_p4 }
   0xe   :  { %p687_p7 = pnand %p686_p6, %p680_p3 }
  0x10   :  { %690 = shalt.err (!%p687_p7)
}
  0x11   :  { %s764_s28 = smov 256   ;;  %s765_s29 = smov 16  }
  0x12   :  { %36 = dma.hbm_to_vmem [thread:$0]  %s932_s1, 4096, %s31_s19, [#allocation6], %s764_s28, %s764_s28, %s765_s29  }
  0x13   :  { %s766_s7 = smov [#allocation2]   ;;  %s691_s11 = scalar_lea.hbm %s931_s0, 1920 }
  0x14   :  { %s18_s8 = sshll.u32 %s766_s7, 4  ;;  %p692_p8 = scmp.ne.s32.totalorder %s931_s0, %s691_s11  ;;  %s19_s8 = int_to_ptr.vmem [resolvable:$true] %s18_s8 }
  0x15   :  { %p695_p9 = scmp.lt.u32.totalorder %s691_s11, %s931_s0 }
  0x17   :  { %p697_p10 = pnand %p695_p9, %p692_p8 }
  0x19   :  { %700 = shalt.err (!%p697_p10)
}
  0x1a   :  { %s701_s16 = scalar_lea.vmem %s19_s8, 1920  ;;  %p706_p12 = scmp.lt.s32.totalorder %s19_s8, %s19_s8 }
  0x1b   :  { %p702_p11 = scmp.ne.s32.totalorder %s19_s8, %s701_s16  ;;  %p707_p13 = scmp.lt.s32.totalorder %s701_s16, %s701_s16 }
  0x1d   :  { %p708_p0 = por %p707_p13, %p706_p12 }
  0x1f   :  { %p709_p1 = pnand %p708_p0, %p702_p11 }
  0x21   :  { %712 = shalt.err (!%p709_p1)
}
  0x22   :  { %s767_s1 = smov 128   ;;  %s768_s17 = smov 8  }
  0x23   :  { %24 = dma.hbm_to_vmem [thread:$0]  %s931_s0, 1920, %s19_s8, [#allocation3], %s767_s1, %s767_s1, %s768_s17  }
  0x24   :  { %s769_s20 = smov [#allocation7]   ;;  %s713_s24 = scalar_lea.hbm %s934_s3, 4096 }
  0x25   :  { %s44_s21 = sshll.u32 %s769_s20, 4  ;;  %p714_p2 = scmp.ne.s32.totalorder %s934_s3, %s713_s24  ;;  %s45_s21 = int_to_ptr.vmem [resolvable:$true] %s44_s21 }
  0x26   :  { %p717_p3 = scmp.lt.u32.totalorder %s713_s24, %s934_s3 }
  0x28   :  { %p719_p4 = pnand %p717_p3, %p714_p2 }
  0x2a   :  { %722 = shalt.err (!%p719_p4)
}
  0x2b   :  { %s723_s29 = scalar_lea.vmem %s45_s21, 4096  ;;  %p728_p6 = scmp.lt.s32.totalorder %s45_s21, %s45_s21 }
  0x2c   :  { %p724_p5 = scmp.ne.s32.totalorder %s45_s21, %s723_s29  ;;  %p729_p7 = scmp.lt.s32.totalorder %s723_s29, %s723_s29 }
  0x2e   :  { %p730_p8 = por %p729_p7, %p728_p6 }
  0x30   :  { %p731_p9 = pnand %p730_p8, %p724_p5 }
  0x32   :  { %734 = shalt.err (!%p731_p9)
}
  0x33   :  { %50 = dma.hbm_to_vmem [thread:$0]  %s934_s3, 4096, %s45_s21, [#allocation6], %s767_s1, %s767_s1, %s768_s17  }
  0x34   :  { %757 = dma.done.wait [#allocation3], 1920  }
  0x35   :  { %758 = vsyncadd [#allocation3], 4294965376 }
  0x36   :  { %759 = dma.done.wait [#allocation6], 8192  }
  0x37   :  { %760 = vsyncadd [#allocation6], 4294959104  ;;  %v770_v0 = vmov 0.0   ;;  %v78_v1 = vld [vmem:[#allocation5 + $0x8] sm:$0xff]  ;;  %v80_v2 = vld [vmem:[#allocation5 + $0x18] sm:$0xff] }
  0x38   :  { %185 = vmatprep.mubr.f32.mxu0 %v770_v0  ;;  %v77_v3 = vld [vmem:[#allocation5] sm:$0xff]  ;;  %v596_v4 = vpack.c.bf16 %v80_v2, %v78_v1  ;;  %v79_v5 = vld [vmem:[#allocation5 + $0x10] sm:$0xff]  ;;  %v82_v6 = vld [vmem:[#allocation5 + $0x28] sm:$0xff] }
  0x39   :  { %v84_v7 = vld [vmem:[#allocation5 + $0x38] sm:$0xff]  ;;  %v598_v8 = vpack.c.bf16 %v79_v5, %v77_v3  ;;  %v81_v10 = vld [vmem:[#allocation5 + $0x20] sm:$0xff]  ;;  %v83_v11 = vld [vmem:[#allocation5 + $0x30] sm:$0xff] }
  0x3a   :  { %v600_v9 = vpack.c.bf16 %v84_v7, %v82_v6  ;;  %v86_v12 = vld [vmem:[#allocation5 + $0x48] sm:$0xff]  ;;  %597 = vmatprep.subr.bf16.mxu0 %v596_v4  ;;  %v88_v13 = vld [vmem:[#allocation5 + $0x58] sm:$0xff]  ;;  %v602_v14 = vpack.c.bf16 %v83_v11, %v81_v10  ;;  %v85_v16 = vld [vmem:[#allocation5 + $0x40] sm:$0xff] }
  0x3b   :  { %599 = vmatpush1.bf16.msra.mxu0 %v598_v8  ;;  %v604_v15 = vpack.c.bf16 %v88_v13, %v86_v12  ;;  %v87_v17 = vld [vmem:[#allocation5 + $0x50] sm:$0xff]  ;;  %v90_v18 = vld [vmem:[#allocation5 + $0x68] sm:$0xff]  ;;  %v92_v19 = vld [vmem:[#allocation5 + $0x78] sm:$0xff] }
  0x3c   :  { %601 = vmatprep.subr.bf16.mxu0 %v600_v9  ;;  %v606_v20 = vpack.c.bf16 %v87_v17, %v85_v16  ;;  %v608_v21 = vpack.c.bf16 %v92_v19, %v90_v18  ;;  %v89_v22 = vld [vmem:[#allocation5 + $0x60] sm:$0xff]  ;;  %v91_v23 = vld [vmem:[#allocation5 + $0x70] sm:$0xff]  ;;  %v94_v24 = vld [vmem:[#allocation5 + $0x88] sm:$0xff] }
  0x3d   :  { %v96_v25 = vld [vmem:[#allocation5 + $0x98] sm:$0xff]  ;;  %v610_v26 = vpack.c.bf16 %v91_v23, %v89_v22  ;;  %v93_v28 = vld [vmem:[#allocation5 + $0x80] sm:$0xff]  ;;  %v95_v29 = vld [vmem:[#allocation5 + $0x90] sm:$0xff] }
  0x3e   :  { %v612_v27 = vpack.c.bf16 %v96_v25, %v94_v24  ;;  %v98_v30 = vld [vmem:[#allocation5 + $0xa8] sm:$0xff]  ;;  %v100_v31 = vld [vmem:[#allocation5 + $0xb8] sm:$0xff]  ;;  %v97_v32 = vld [vmem:[#allocation5 + $0xa0] sm:$0xff]  ;;  %v614_v35 = vpack.c.bf16 %v95_v29, %v93_v28 }
  0x3f   :  { %603 = vmatpush1.bf16.msra.mxu0 %v602_v14  ;;  %v99_v33 = vld [vmem:[#allocation5 + $0xb0] sm:$0xff]  ;;  %v322_v34 = vld [vmem:[#allocation7 + $0x80] sm:$0xff]  ;;  %v102_v36 = vld [vmem:[#allocation5 + $0xc8] sm:$0xff]  ;;  %v616_v41 = vpack.c.bf16 %v100_v31, %v98_v30 }
  0x40   :  { %605 = vmatprep.subr.bf16.mxu0 %v604_v15  ;;  %v104_v37 = vld [vmem:[#allocation5 + $0xd8] sm:$0xff]  ;;  %v323_v38 = vld [vmem:[#allocation7 + $0x88] sm:$0xff]  ;;  %v306_v39 = vld [vmem:[#allocation7] sm:$0xff]  ;;  %v618_v51 = vpack.c.bf16 %v99_v33, %v97_v32 }
  0x41   :  { %v307_v40 = vld [vmem:[#allocation7 + $0x8] sm:$0xff]  ;;  %v628_v42 = vpack.c.bf16 %v323_v38, %v322_v34  ;;  %v324_v44 = vld [vmem:[#allocation7 + $0x90] sm:$0xff]  ;;  %v325_v45 = vld [vmem:[#allocation7 + $0x98] sm:$0xff]  ;;  %v620_v55 = vpack.c.bf16 %v104_v37, %v102_v36 }
  0x42   :  { %v630_v43 = vpack.c.bf16 %v307_v40, %v306_v39  ;;  %v308_v46 = vld [vmem:[#allocation7 + $0x10] sm:$0xff]  ;;  %v632_v47 = vpack.c.bf16 %v325_v45, %v324_v44  ;;  %v309_v48 = vld [vmem:[#allocation7 + $0x18] sm:$0xff]  ;;  %v326_v49 = vld [vmem:[#allocation7 + $0xa0] sm:$0xff] }
  0x43   :  { %607 = vmatpush1.bf16.msra.mxu0 %v606_v20  ;;  %v327_v50 = vld [vmem:[#allocation7 + $0xa8] sm:$0xff]  ;;  %629 = vmatprep.subr.bf16.mxu1 %v628_v42  ;;  %v101_v52 = vld [vmem:[#allocation5 + $0xc0] sm:$0xff]  ;;  %v103_v53 = vld [vmem:[#allocation5 + $0xd0] sm:$0xff]  ;;  %v634_v54 = vpack.c.bf16 %v309_v48, %v308_v46 }
  0x44   :  { %609 = vmatprep.subr.bf16.mxu0 %v608_v21  ;;  %631 = vmatpush3.bf16.msra.mxu1 %v630_v43  ;;  %v106_v56 = vld [vmem:[#allocation5 + $0xe8] sm:$0xff]  ;;  %v636_v57 = vpack.c.bf16 %v327_v50, %v326_v49  ;;  %v310_v58 = vld [vmem:[#allocation7 + $0x20] sm:$0xff]  ;;  %v108_v60 = vld [vmem:[#allocation5 + $0xf8] sm:$0xff]  ;;  %v622_v63 = vpack.c.bf16 %v103_v53, %v101_v52  ;;  %v111_v49 = vlaneseq }
  0x45   :  { %633 = vmatprep.subr.bf16.mxu1 %v632_v47  ;;  %v311_v59 = vld [vmem:[#allocation7 + $0x28] sm:$0xff]  ;;  %v328_v61 = vld [vmem:[#allocation7 + $0xb0] sm:$0xff]  ;;  %v329_v62 = vld [vmem:[#allocation7 + $0xb8] sm:$0xff]  ;;  %v624_v3 = vpack.c.bf16 %v108_v60, %v106_v56 }
  0x46   :  { %v105_v1 = vld [vmem:[#allocation5 + $0xe0] sm:$0xff]  ;;  %v638_v2 = vpack.c.bf16 %v311_v59, %v310_v58  ;;  %v107_v4 = vld [vmem:[#allocation5 + $0xf0] sm:$0xff]  ;;  %v640_v5 = vpack.c.bf16 %v329_v62, %v328_v61  ;;  %v313_v7 = vld [vmem:[#allocation7 + $0x38] sm:$0xff]  ;;  %v112_v50 = vshrl.u32 %v111_v49, 7 }
  0x47   :  { %611 = vmatpush1.bf16.msra.mxu0 %v610_v26  ;;  %v312_v6 = vld [vmem:[#allocation7 + $0x30] sm:$0xff]  ;;  %v330_v8 = vld [vmem:[#allocation7 + $0xc0] sm:$0xff]  ;;  %v331_v9 = vld [vmem:[#allocation7 + $0xc8] sm:$0xff]  ;;  %v626_v10 = vpack.c.bf16 %v107_v4, %v105_v1 }
  0x48   :  { %613 = vmatprep.subr.bf16.mxu0 %v612_v27  ;;  %635 = vmatpush3.bf16.msra.mxu1 %v634_v54  ;;  %v642_v11 = vpack.c.bf16 %v313_v7, %v312_v6  ;;  %v644_v12 = vpack.c.bf16 %v331_v9, %v330_v8  ;;  %v314_v13 = vld [vmem:[#allocation7 + $0x40] sm:$0xff]  ;;  %v315_v14 = vld [vmem:[#allocation7 + $0x48] sm:$0xff]  ;;  %v332_v15 = vld [vmem:[#allocation7 + $0xd0] sm:$0xff]  ;;  %v117_v52 = vsub.s32 1, %v112_v50 }
  0x49   :  { %637 = vmatprep.subr.bf16.mxu1 %v636_v57  ;;  %v333_v16 = vld [vmem:[#allocation7 + $0xd8] sm:$0xff]  ;;  %v62_v17 = vld [vmem:[#allocation2] sm:$0xff]  ;;  %v646_v18 = vpack.c.bf16 %v315_v14, %v314_v13  ;;  %v316_v20 = vld [vmem:[#allocation7 + $0x50] sm:$0xff] }
  0x4a   :  { %v648_v19 = vpack.c.bf16 %v333_v16, %v332_v15  ;;  %v317_v21 = vld [vmem:[#allocation7 + $0x58] sm:$0xff]  ;;  %v334_v22 = vld [vmem:[#allocation7 + $0xe0] sm:$0xff]  ;;  %v335_v23 = vld [vmem:[#allocation7 + $0xe8] sm:$0xff] }
  0x4b   :  { %615 = vmatpush1.bf16.msra.mxu0 %v614_v35  ;;  %v63_v24 = vld [vmem:[#allocation2 + $0x8] sm:$0xff]  ;;  %v650_v25 = vpack.c.bf16 %v317_v21, %v316_v20  ;;  %v652_v26 = vpack.c.bf16 %v335_v23, %v334_v22  ;;  %v64_v27 = vld [vmem:[#allocation2 + $0x10] sm:$0xff]  ;;  %v65_v28 = vld [vmem:[#allocation2 + $0x18] sm:$0xff] }
  0x4c   :  { %617 = vmatprep.subr.bf16.mxu0 %v616_v41  ;;  %639 = vmatpush3.bf16.msra.mxu1 %v638_v2  ;;  %v66_v29 = vld [vmem:[#allocation2 + $0x20] sm:$0xff]  ;;  %v67_v30 = vld [vmem:[#allocation2 + $0x28] sm:$0xff]  ;;  %v68_v31 = vld [vmem:[#allocation2 + $0x30] sm:$0xff] }
  0x4d   :  { %641 = vmatprep.subr.bf16.mxu1 %v640_v5  ;;  %v69_v32 = vld [vmem:[#allocation2 + $0x38] sm:$0xff]  ;;  %v70_v33 = vld [vmem:[#allocation2 + $0x40] sm:$0xff]  ;;  %v71_v34 = vld [vmem:[#allocation2 + $0x48] sm:$0xff] }
  0x4e   :  { %v72_v35 = vld [vmem:[#allocation2 + $0x50] sm:$0xff]  ;;  %v73_v36 = vld [vmem:[#allocation2 + $0x58] sm:$0xff]  ;;  %v74_v37 = vld [vmem:[#allocation2 + $0x60] sm:$0xff] }
  0x4f   :  { %619 = vmatpush1.bf16.msra.mxu0 %v618_v51  ;;  %v75_v38 = vld [vmem:[#allocation2 + $0x68] sm:$0xff]  ;;  %v76_v39 = vld [vmem:[#allocation2 + $0x70] sm:$0xff]  ;;  %v318_v40 = vld [vmem:[#allocation7 + $0x60] sm:$0xff]  ;;  %v113_v51 = vsub.s32 0, %v112_v50 }
  0x50   :  { %621 = vmatprep.subr.bf16.mxu0 %v620_v55  ;;  %643 = vmatpush3.bf16.msra.mxu1 %v642_v11  ;;  %v319_v41 = vld [vmem:[#allocation7 + $0x68] sm:$0xff]  ;;  %v336_v43 = vld [vmem:[#allocation7 + $0xf0] sm:$0xff]  ;;  %v337_v44 = vld [vmem:[#allocation7 + $0xf8] sm:$0xff] }
  0x51   :  { %645 = vmatprep.subr.bf16.mxu1 %v644_v12  ;;  %v654_v42 = vpack.c.bf16 %v319_v41, %v318_v40  ;;  %v656_v45 = vpack.c.bf16 %v337_v44, %v336_v43  ;;  %v320_v46 = vld [vmem:[#allocation7 + $0x70] sm:$0xff]  ;;  %v321_v47 = vld [vmem:[#allocation7 + $0x78] sm:$0xff] }
  0x52   :  { %v658_v48 = vpack.c.bf16 %v321_v47, %v320_v46 }
  0x53   :  { %623 = vmatpush1.bf16.msra.mxu0 %v622_v63 }
  0x54   :  { %625 = vmatprep.subr.bf16.mxu0 %v624_v3  ;;  %647 = vmatpush3.bf16.msra.mxu1 %v646_v18 }
  0x55   :  { %649 = vmatprep.subr.bf16.mxu1 %v648_v19 }
  0x57   :  { %627 = vmatpush1.bf16.msra.mxu0 %v626_v10 }
  0x58   :  { %651 = vmatpush3.bf16.msra.mxu1 %v650_v25 }
  0x59   :  { %653 = vmatprep.subr.bf16.mxu1 %v652_v26 }
  0x5a   :  { %186 = vmatmul.mubr.f32.vlgmr.msra.gmra.mrb[0].mxu0 %v62_v17 }
  0x5b   :  { %191 = vmatprep.mubr.f32.mxu0 %v770_v0 }
  0x5c   :  { %655 = vmatpush3.bf16.msra.mxu1 %v654_v42 }
  0x5d   :  { %657 = vmatprep.subr.bf16.mxu1 %v656_v45 }
  0x5e   :  { %192 = vmatmul.mubr.f32.gmra.mrb[2].mxu0 %v63_v24 }
  0x5f   :  { %197 = vmatprep.mubr.f32.mxu0 %v770_v0 }
  0x60   :  { %659 = vmatpush3.bf16.msra.mxu1 %v658_v48 }
  0x62   :  { %198 = vmatmul.mubr.f32.gmra.mrb[4].mxu0 %v64_v27 }
  0x63   :  { %203 = vmatprep.mubr.f32.mxu0 %v770_v0 }
  0x66   :  { %204 = vmatmul.mubr.f32.gmra.mrb[6].mxu0 %v65_v28 }
  0x67   :  { %209 = vmatprep.mubr.f32.mxu0 %v770_v0 }
  0x6a   :  { %210 = vmatmul.mubr.f32.gmra.mrb[8].mxu0 %v66_v29 }
  0x6b   :  { %215 = vmatprep.mubr.f32.mxu0 %v770_v0 }
  0x6e   :  { %216 = vmatmul.mubr.f32.gmra.mrb[10].mxu0 %v67_v30 }
  0x6f   :  { %221 = vmatprep.mubr.f32.mxu0 %v770_v0 }
  0x72   :  { %222 = vmatmul.mubr.f32.gmra.mrb[12].mxu0 %v68_v31 }
  0x73   :  { %227 = vmatprep.mubr.f32.mxu0 %v770_v0 }
  0x76   :  { %228 = vmatmul.mubr.f32.gmra.mrb[14].mxu0 %v69_v32 }
  0x77   :  { %233 = vmatprep.mubr.f32.mxu0 %v770_v0 }
  0x7a   :  { %234 = vmatmul.mubr.f32.gmra.mrb[16].mxu0 %v70_v33 }
  0x7b   :  { %239 = vmatprep.mubr.f32.mxu0 %v770_v0 }
  0x7e   :  { %240 = vmatmul.mubr.f32.gmra.mrb[18].mxu0 %v71_v34 }
  0x7f   :  { %245 = vmatprep.mubr.f32.mxu0 %v770_v0 }
  0x82   :  { %246 = vmatmul.mubr.f32.gmra.mrb[20].mxu0 %v72_v35 }
  0x83   :  { %251 = vmatprep.mubr.f32.mxu0 %v770_v0 }
  0x86   :  { %252 = vmatmul.mubr.f32.gmra.mrb[22].mxu0 %v73_v36 }
  0x87   :  { %257 = vmatprep.mubr.f32.mxu0 %v770_v0 }
  0x8a   :  { %258 = vmatmul.mubr.f32.gmra.mrb[24].mxu0 %v74_v37 }
  0x8b   :  { %263 = vmatprep.mubr.f32.mxu0 %v770_v0 }
  0x8e   :  { %264 = vmatmul.mubr.f32.gmra.mrb[26].mxu0 %v75_v38 }
  0x8f   :  { %269 = vmatprep.mubr.f32.mxu0 %v770_v0  ;;  %v109_v0 = vld [vmem:[%s933_s2] sm:$0x3] }
  0x90   :  { %v862_v53 = vrot.slane %v109_v0, %v113_v51  ;;  %v864_v54 = vrot.slane %v109_v0, %v117_v52 }
  0x92   :  { %270 = vmatmul.mubr.f32.gmra.mrb[28].mxu0 %v76_v39 }
 0x12d   :  { %v187_v55 = vpop.f32.mrb[0].mxu0 }
 0x12e   :  { %v188_v56 = vadd.f32 %v187_v55, %v862_v53  ;;  %v189_v57 = vpop.f32.mrb[1].mxu0 }
 0x12f   :  { %v190_v58 = vadd.f32 %v189_v57, %v864_v54 }
 0x130   :  { %v276_v61 = vmax.f32 %v188_v56, 0.0 }
 0x131   :  { %v193_v59 = vpop.f32.mrb[2].mxu0  ;;  %v277_v60 = vmax.f32 %v190_v58, 0.0 }
 0x132   :  { %v194_v62 = vadd.f32 %v193_v59, %v862_v53  ;;  %v195_v63 = vpop.f32.mrb[3].mxu0 }
 0x133   :  { %v196_v1 = vadd.f32 %v195_v63, %v864_v54  ;;  %409 = vmatprep.mubr.f32.mxu1 %v277_v60 }
 0x134   :  { %410 = vmatmul.mubr.f32.vlgmr.msra.gmra.mrb[0].mxu1 %v276_v61  ;;  %v278_v4 = vmax.f32 %v194_v62, 0.0 }
 0x135   :  { %v279_v2 = vmax.f32 %v196_v1, 0.0  ;;  %v199_v3 = vpop.f32.mrb[4].mxu0 }
 0x136   :  { %v200_v5 = vadd.f32 %v199_v3, %v862_v53  ;;  %v201_v6 = vpop.f32.mrb[5].mxu0 }
 0x137   :  { %v202_v7 = vadd.f32 %v201_v6, %v864_v54  ;;  %414 = vmatprep.mubr.f32.mxu1 %v279_v2 }
 0x138   :  { %415 = vmatmul.mubr.f32.gmra.mrb[2].mxu1 %v278_v4  ;;  %v280_v10 = vmax.f32 %v200_v5, 0.0 }
 0x139   :  { %v281_v8 = vmax.f32 %v202_v7, 0.0  ;;  %v205_v9 = vpop.f32.mrb[6].mxu0 }
 0x13a   :  { %v206_v11 = vadd.f32 %v205_v9, %v862_v53  ;;  %v207_v12 = vpop.f32.mrb[7].mxu0 }
 0x13b   :  { %v208_v13 = vadd.f32 %v207_v12, %v864_v54  ;;  %419 = vmatprep.mubr.f32.mxu1 %v281_v8 }
 0x13c   :  { %420 = vmatmul.mubr.f32.gmra.mrb[4].mxu1 %v280_v10  ;;  %v282_v16 = vmax.f32 %v206_v11, 0.0 }
 0x13d   :  { %v283_v14 = vmax.f32 %v208_v13, 0.0  ;;  %v211_v15 = vpop.f32.mrb[8].mxu0 }
 0x13e   :  { %v212_v17 = vadd.f32 %v211_v15, %v862_v53  ;;  %v213_v18 = vpop.f32.mrb[9].mxu0 }
 0x13f   :  { %v214_v19 = vadd.f32 %v213_v18, %v864_v54  ;;  %424 = vmatprep.mubr.f32.mxu1 %v283_v14 }
 0x140   :  { %425 = vmatmul.mubr.f32.gmra.mrb[6].mxu1 %v282_v16  ;;  %v284_v22 = vmax.f32 %v212_v17, 0.0 }
 0x141   :  { %v285_v20 = vmax.f32 %v214_v19, 0.0  ;;  %v217_v21 = vpop.f32.mrb[10].mxu0 }
 0x142   :  { %v218_v23 = vadd.f32 %v217_v21, %v862_v53  ;;  %v219_v24 = vpop.f32.mrb[11].mxu0  ;;  %v899_v21 = vld [vmem:[%s935_s4] ss:$0 sm:$0xff]  ;;  %s771_s4 = smov [#allocation8]  }
 0x143   :  { %v220_v25 = vadd.f32 %v219_v24, %v864_v54  ;;  %429 = vmatprep.mubr.f32.mxu1 %v285_v20  ;;  %s505_s8 = sshll.u32 %s771_s4, 4  ;;  %s506_s8 = int_to_ptr.vmem [resolvable:$true] %s505_s8 }
 0x144   :  { %430 = vmatmul.mubr.f32.gmra.mrb[8].mxu1 %v284_v22  ;;  %v286_v28 = vmax.f32 %v218_v23, 0.0  ;;  %s735_s9 = scalar_lea.vmem %s506_s8, 1920  ;;  %p740_p11 = scmp.lt.s32.totalorder %s506_s8, %s506_s8 }
 0x145   :  { %v287_v26 = vmax.f32 %v220_v25, 0.0  ;;  %v223_v27 = vpop.f32.mrb[12].mxu0  ;;  %p736_p10 = scmp.ne.s32.totalorder %s506_s8, %s735_s9  ;;  %p741_p12 = scmp.lt.s32.totalorder %s735_s9, %s735_s9 }
 0x146   :  { %v224_v29 = vadd.f32 %v223_v27, %v862_v53  ;;  %v225_v30 = vpop.f32.mrb[13].mxu0 }
 0x147   :  { %v226_v31 = vadd.f32 %v225_v30, %v864_v54  ;;  %434 = vmatprep.mubr.f32.mxu1 %v287_v26  ;;  %p742_p13 = por %p741_p12, %p740_p11 }
 0x148   :  { %435 = vmatmul.mubr.f32.gmra.mrb[10].mxu1 %v286_v28  ;;  %v288_v34 = vmax.f32 %v224_v29, 0.0 }
 0x149   :  { %v289_v32 = vmax.f32 %v226_v31, 0.0  ;;  %v229_v33 = vpop.f32.mrb[14].mxu0  ;;  %p743_p0 = pnand %p742_p13, %p736_p10 }
 0x14a   :  { %v230_v35 = vadd.f32 %v229_v33, %v862_v53  ;;  %v231_v36 = vpop.f32.mrb[15].mxu0 }
 0x14b   :  { %v232_v37 = vadd.f32 %v231_v36, %v864_v54  ;;  %439 = vmatprep.mubr.f32.mxu1 %v289_v32 }
 0x14c   :  { %440 = vmatmul.mubr.f32.gmra.mrb[12].mxu1 %v288_v34  ;;  %v290_v40 = vmax.f32 %v230_v35, 0.0 }
 0x14d   :  { %v291_v38 = vmax.f32 %v232_v37, 0.0  ;;  %v235_v39 = vpop.f32.mrb[16].mxu0 }
 0x14e   :  { %v236_v41 = vadd.f32 %v235_v39, %v862_v53  ;;  %v237_v42 = vpop.f32.mrb[17].mxu0 }
 0x14f   :  { %v238_v43 = vadd.f32 %v237_v42, %v864_v54  ;;  %444 = vmatprep.mubr.f32.mxu1 %v291_v38 }
 0x150   :  { %445 = vmatmul.mubr.f32.gmra.mrb[14].mxu1 %v290_v40  ;;  %v292_v46 = vmax.f32 %v236_v41, 0.0 }
 0x151   :  { %v293_v44 = vmax.f32 %v238_v43, 0.0  ;;  %v241_v45 = vpop.f32.mrb[18].mxu0 }
 0x152   :  { %v242_v47 = vadd.f32 %v241_v45, %v862_v53  ;;  %v243_v48 = vpop.f32.mrb[19].mxu0 }
 0x153   :  { %v244_v49 = vadd.f32 %v243_v48, %v864_v54  ;;  %449 = vmatprep.mubr.f32.mxu1 %v293_v44 }
 0x154   :  { %450 = vmatmul.mubr.f32.gmra.mrb[16].mxu1 %v292_v46  ;;  %v294_v0 = vmax.f32 %v242_v47, 0.0 }
 0x155   :  { %v295_v50 = vmax.f32 %v244_v49, 0.0  ;;  %v247_v51 = vpop.f32.mrb[20].mxu0 }
 0x156   :  { %v248_v52 = vadd.f32 %v247_v51, %v862_v53  ;;  %v249_v55 = vpop.f32.mrb[21].mxu0 }
 0x157   :  { %v250_v56 = vadd.f32 %v249_v55, %v864_v54  ;;  %454 = vmatprep.mubr.f32.mxu1 %v295_v50 }
 0x158   :  { %455 = vmatmul.mubr.f32.gmra.mrb[18].mxu1 %v294_v0  ;;  %v296_v59 = vmax.f32 %v248_v52, 0.0 }
 0x159   :  { %v297_v57 = vmax.f32 %v250_v56, 0.0  ;;  %v253_v58 = vpop.f32.mrb[22].mxu0 }
 0x15a   :  { %v254_v60 = vadd.f32 %v253_v58, %v862_v53  ;;  %v255_v61 = vpop.f32.mrb[23].mxu0 }
 0x15b   :  { %v256_v62 = vadd.f32 %v255_v61, %v864_v54  ;;  %459 = vmatprep.mubr.f32.mxu1 %v297_v57 }
 0x15c   :  { %460 = vmatmul.mubr.f32.gmra.mrb[20].mxu1 %v296_v59  ;;  %v298_v2 = vmax.f32 %v254_v60, 0.0 }
 0x15d   :  { %v299_v63 = vmax.f32 %v256_v62, 0.0  ;;  %v259_v1 = vpop.f32.mrb[24].mxu0 }
 0x15e   :  { %v260_v3 = vadd.f32 %v259_v1, %v862_v53  ;;  %v261_v4 = vpop.f32.mrb[25].mxu0 }
 0x15f   :  { %v262_v5 = vadd.f32 %v261_v4, %v864_v54  ;;  %464 = vmatprep.mubr.f32.mxu1 %v299_v63 }
 0x160   :  { %465 = vmatmul.mubr.f32.gmra.mrb[22].mxu1 %v298_v2  ;;  %v300_v8 = vmax.f32 %v260_v3, 0.0 }
 0x161   :  { %v301_v6 = vmax.f32 %v262_v5, 0.0  ;;  %v265_v7 = vpop.f32.mrb[26].mxu0 }
 0x162   :  { %v266_v9 = vadd.f32 %v265_v7, %v862_v53  ;;  %v267_v10 = vpop.f32.mrb[27].mxu0 }
 0x163   :  { %v268_v11 = vadd.f32 %v267_v10, %v864_v54  ;;  %469 = vmatprep.mubr.f32.mxu1 %v301_v6 }
 0x164   :  { %470 = vmatmul.mubr.f32.gmra.mrb[24].mxu1 %v300_v8  ;;  %v302_v14 = vmax.f32 %v266_v9, 0.0 }
 0x165   :  { %v303_v12 = vmax.f32 %v268_v11, 0.0  ;;  %v271_v13 = vpop.f32.mrb[28].mxu0 }
 0x166   :  { %v272_v15 = vadd.f32 %v271_v13, %v862_v53  ;;  %v273_v16 = vpop.f32.mrb[29].mxu0 }
 0x167   :  { %v274_v17 = vadd.f32 %v273_v16, %v864_v54  ;;  %474 = vmatprep.mubr.f32.mxu1 %v303_v12 }
 0x168   :  { %475 = vmatmul.mubr.f32.gmra.mrb[26].mxu1 %v302_v14  ;;  %v304_v19 = vmax.f32 %v272_v15, 0.0 }
 0x169   :  { %v305_v18 = vmax.f32 %v274_v17, 0.0 }
 0x16b   :  { %479 = vmatprep.mubr.f32.mxu1 %v305_v18 }
 0x16c   :  { %480 = vmatmul.mubr.f32.gmra.mrb[28].mxu1 %v304_v19 }
 0x207   :  { %v551_v20 = vpop.f32.mrb[0].mxu1 }
 0x208   :  { %v552_v22 = vpop.f32.mrb[1].mxu1 }
 0x209   :  { %v553_v23 = vadd.f32 %v552_v22, %v551_v20 }
 0x20b   :  { %v412_v24 = vadd.f32 %v553_v23, %v899_v21  ;;  %v554_v53 = vpop.f32.mrb[2].mxu1 }
 0x20c   :  { %v555_v25 = vpop.f32.mrb[3].mxu1 }
 0x20d   :  { %485 = vst [vmem:[#allocation8] sm:$0xff] %v412_v24  ;;  %v556_v54 = vadd.f32 %v555_v25, %v554_v53 }
 0x20f   :  { %v417_v26 = vadd.f32 %v556_v54, %v899_v21  ;;  %v557_v27 = vpop.f32.mrb[4].mxu1 }
 0x210   :  { %v558_v28 = vpop.f32.mrb[5].mxu1 }
 0x211   :  { %486 = vst [vmem:[#allocation8 + $0x8] sm:$0xff] %v417_v26  ;;  %v559_v29 = vadd.f32 %v558_v28, %v557_v27 }
 0x213   :  { %v422_v30 = vadd.f32 %v559_v29, %v899_v21  ;;  %v560_v31 = vpop.f32.mrb[6].mxu1 }
 0x214   :  { %v561_v32 = vpop.f32.mrb[7].mxu1 }
 0x215   :  { %487 = vst [vmem:[#allocation8 + $0x10] sm:$0xff] %v422_v30  ;;  %v562_v33 = vadd.f32 %v561_v32, %v560_v31 }
 0x217   :  { %v427_v34 = vadd.f32 %v562_v33, %v899_v21  ;;  %v563_v35 = vpop.f32.mrb[8].mxu1 }
 0x218   :  { %v564_v36 = vpop.f32.mrb[9].mxu1 }
 0x219   :  { %488 = vst [vmem:[#allocation8 + $0x18] sm:$0xff] %v427_v34  ;;  %v565_v37 = vadd.f32 %v564_v36, %v563_v35 }
 0x21b   :  { %v432_v38 = vadd.f32 %v565_v37, %v899_v21  ;;  %v566_v39 = vpop.f32.mrb[10].mxu1 }
 0x21c   :  { %v567_v40 = vpop.f32.mrb[11].mxu1 }
 0x21d   :  { %489 = vst [vmem:[#allocation8 + $0x20] sm:$0xff] %v432_v38  ;;  %v568_v41 = vadd.f32 %v567_v40, %v566_v39 }
 0x21f   :  { %v437_v42 = vadd.f32 %v568_v41, %v899_v21  ;;  %v569_v43 = vpop.f32.mrb[12].mxu1 }
 0x220   :  { %v570_v44 = vpop.f32.mrb[13].mxu1 }
 0x221   :  { %490 = vst [vmem:[#allocation8 + $0x28] sm:$0xff] %v437_v42  ;;  %v571_v45 = vadd.f32 %v570_v44, %v569_v43 }
 0x223   :  { %v442_v46 = vadd.f32 %v571_v45, %v899_v21  ;;  %v572_v47 = vpop.f32.mrb[14].mxu1 }
 0x224   :  { %v573_v48 = vpop.f32.mrb[15].mxu1 }
 0x225   :  { %491 = vst [vmem:[#allocation8 + $0x30] sm:$0xff] %v442_v46  ;;  %v574_v49 = vadd.f32 %v573_v48, %v572_v47 }
 0x227   :  { %v447_v50 = vadd.f32 %v574_v49, %v899_v21  ;;  %v575_v51 = vpop.f32.mrb[16].mxu1 }
 0x228   :  { %v576_v0 = vpop.f32.mrb[17].mxu1 }
 0x229   :  { %492 = vst [vmem:[#allocation8 + $0x38] sm:$0xff] %v447_v50  ;;  %v577_v52 = vadd.f32 %v576_v0, %v575_v51 }
 0x22b   :  { %v452_v55 = vadd.f32 %v577_v52, %v899_v21  ;;  %v578_v56 = vpop.f32.mrb[18].mxu1 }
 0x22c   :  { %v579_v57 = vpop.f32.mrb[19].mxu1 }
 0x22d   :  { %493 = vst [vmem:[#allocation8 + $0x40] sm:$0xff] %v452_v55  ;;  %v580_v58 = vadd.f32 %v579_v57, %v578_v56 }
 0x22f   :  { %v457_v59 = vadd.f32 %v580_v58, %v899_v21  ;;  %v581_v60 = vpop.f32.mrb[20].mxu1 }
 0x230   :  { %v582_v61 = vpop.f32.mrb[21].mxu1 }
 0x231   :  { %494 = vst [vmem:[#allocation8 + $0x48] sm:$0xff] %v457_v59  ;;  %v583_v62 = vadd.f32 %v582_v61, %v581_v60 }
 0x233   :  { %v462_v63 = vadd.f32 %v583_v62, %v899_v21  ;;  %v584_v1 = vpop.f32.mrb[22].mxu1 }
 0x234   :  { %v585_v2 = vpop.f32.mrb[23].mxu1 }
 0x235   :  { %495 = vst [vmem:[#allocation8 + $0x50] sm:$0xff] %v462_v63  ;;  %v586_v3 = vadd.f32 %v585_v2, %v584_v1 }
 0x237   :  { %v467_v4 = vadd.f32 %v586_v3, %v899_v21  ;;  %v587_v5 = vpop.f32.mrb[24].mxu1 }
 0x238   :  { %v588_v6 = vpop.f32.mrb[25].mxu1 }
 0x239   :  { %496 = vst [vmem:[#allocation8 + $0x58] sm:$0xff] %v467_v4  ;;  %v589_v7 = vadd.f32 %v588_v6, %v587_v5 }
 0x23b   :  { %v472_v8 = vadd.f32 %v589_v7, %v899_v21  ;;  %v590_v9 = vpop.f32.mrb[26].mxu1 }
 0x23c   :  { %v591_v10 = vpop.f32.mrb[27].mxu1 }
 0x23d   :  { %497 = vst [vmem:[#allocation8 + $0x60] sm:$0xff] %v472_v8  ;;  %v592_v11 = vadd.f32 %v591_v10, %v590_v9 }
 0x23f   :  { %v477_v12 = vadd.f32 %v592_v11, %v899_v21  ;;  %v593_v13 = vpop.f32.mrb[28].mxu1 }
 0x240   :  { %v594_v14 = vpop.f32.mrb[29].mxu1 }
 0x241   :  { %498 = vst [vmem:[#allocation8 + $0x68] sm:$0xff] %v477_v12  ;;  %v595_v15 = vadd.f32 %v594_v14, %v593_v13 }
 0x243   :  { %v482_v16 = vadd.f32 %v595_v15, %v899_v21 }
 0x245   :  { %499 = vst [vmem:[#allocation8 + $0x70] sm:$0xff] %v482_v16 }
 0x246   :  { %746 = shalt.err (!%p743_p0)
}
 0x247   :  { %s747_s12 = scalar_lea.hbm %s936_s5, 1920 }
 0x248   :  { %p748_p1 = scmp.ne.s32.totalorder %s936_s5, %s747_s12  ;;  %p751_p2 = scmp.lt.u32.totalorder %s747_s12, %s936_s5 }
 0x24a   :  { %p753_p3 = pnand %p751_p2, %p748_p1 }
 0x24c   :  { %756 = shalt.err (!%p753_p3)
}
 0x24d   :  { %511 = dma.vmem_to_hbm [thread:$0]  %s506_s8, 1920, %s936_s5, [#allocation4], %s767_s1, %s767_s1, %s768_s17  }
 0x24e   :  { %761 = dma.done.wait [#allocation4], 1920  }
 0x24f   :  { %762 = vsyncadd [#allocation4], 4294965376 }
 0x250   :  { %515 = vsyncpa [#allocation3], 1 }
 0x251   :  { %516 = vsyncpa [#allocation6], 1 }
 0x252   :  { %517 = vsyncpa [#allocation4], 1 }

</bundles_post_ra>
